<compile_context>
chip_gen: v7x
topology: tpu7x:2x2x1
jax: 0.10.0
libtpu: 0.0.40
codegen_flags: <defaults>
</compile_context>

<pallas_src>
import functools

import jax
import jax.numpy as jnp
from jax import lax
from jax.experimental import pallas as pl
from jax.experimental.pallas import tpu as pltpu

LANE = 128


def _round_up(n, m):
    return ((n + m - 1) // m) * m


def mlp_policy_kernel(x_ref, w1_ref, b1_ref, w2_ref, b2_ref,
                      wh_ref, bh_ref, temp_ref, out_ref, *, num_outputs):
    x = x_ref[...]                                                   # (TB, obs) bf16

    # MLP trunk: Linear -> ReLU -> Linear (bf16 MXU operands, f32 accumulation)
    h1 = jnp.dot(x, w1_ref[...], preferred_element_type=jnp.float32) + b1_ref[...]
    h1 = jnp.maximum(h1, 0.0)
    feats = jnp.dot(h1.astype(w2_ref.dtype), w2_ref[...],
                    preferred_element_type=jnp.float32) + b2_ref[...]

    # Fused heads: lanes [0, num_outputs) = adv, lane num_outputs = value.
    head = jnp.dot(feats.astype(wh_ref.dtype), wh_ref[...],
                   preferred_element_type=jnp.float32) + bh_ref[...]  # (TB, 128)

    # temperature scale: scalar in SMEM -> tiny vreg -> EUP exp
    t = jnp.full((1, 1), temp_ref[0, 0], dtype=jnp.float32)
    temp_scale = jnp.exp(t)

    lane = lax.broadcasted_iota(jnp.int32, head.shape, 1)
    is_logit = lane < num_outputs

    # Masked, max-stabilized softmax over the logit lanes only.
    logits = jnp.where(is_logit, head * temp_scale, jnp.float32(-1e30))
    m = jnp.max(logits, axis=-1, keepdims=True)
    e = jnp.exp(logits - m)                       # padded lanes underflow to 0
    denom = jnp.sum(e, axis=-1, keepdims=True)
    probs = e * pl.reciprocal(denom, approx=True)

    # Lane-dense output slab: probs in logit lanes, raw value in its lane.
    out = probs + jnp.where(lane == num_outputs, head, 0.0)
    out_ref[...] = out.astype(out_ref.dtype)


def mlp_policy_forward(x, params, num_outputs, *, tile_b=512):
    B, obs_dim = x.shape
    hidden = params["w1"].shape[1]
    head_lanes = params["wh"].shape[1]

    # Batch tile: multiple of 16 (bf16 sublane packing), capped at tile_b.
    tb = min(_round_up(tile_b, 16), _round_up(B, 16))
    Bp = _round_up(B, tb)

    xb = x.astype(jnp.bfloat16)
    if Bp != B:
        xb = jnp.pad(xb, ((0, Bp - B), (0, 0)))

    grid = (Bp // tb,)

    kernel = functools.partial(mlp_policy_kernel, num_outputs=num_outputs)

    flops = 2 * Bp * (obs_dim * hidden + hidden * hidden + hidden * head_lanes)
    bytes_accessed = (Bp * obs_dim * 2 + Bp * head_lanes * 4
                      + (obs_dim * hidden + hidden * hidden + hidden * head_lanes) * 2
                      + (2 * hidden + head_lanes + 1) * 4)
    cost = pl.CostEstimate(flops=flops,
                           transcendentals=Bp * head_lanes,
                           bytes_accessed=bytes_accessed)

    out = pl.pallas_call(
        kernel,
        out_shape=jax.ShapeDtypeStruct((Bp, head_lanes), jnp.float32),
        grid=grid,
        in_specs=[
            pl.BlockSpec((tb, obs_dim), lambda i: (i, 0)),          # x: streamed
            pl.BlockSpec((obs_dim, hidden), lambda i: (0, 0)),      # w1: resident
            pl.BlockSpec((1, hidden), lambda i: (0, 0)),            # b1
            pl.BlockSpec((hidden, hidden), lambda i: (0, 0)),       # w2
            pl.BlockSpec((1, hidden), lambda i: (0, 0)),            # b2
            pl.BlockSpec((hidden, head_lanes), lambda i: (0, 0)),   # fused head W
            pl.BlockSpec((1, head_lanes), lambda i: (0, 0)),        # fused head b
            pl.BlockSpec(memory_space=pltpu.MemorySpace.SMEM),      # temp scalar
        ],
        out_specs=pl.BlockSpec((tb, head_lanes), lambda i: (i, 0)),
        compiler_params=pltpu.CompilerParams(
            dimension_semantics=("parallel",)),
        cost_estimate=cost,
    )(xb, params["w1"], params["b1"], params["w2"], params["b2"],
      params["wh"], params["bh"], params["temp"])

    probs = out[:B, :num_outputs]
    value = out[:B, num_outputs:num_outputs + 1]
    return probs, value


def init_params(key, obs_dim, hidden, num_outputs):
    """Deterministic init mirroring the module's shapes.

    Layer-1 weight: xavier_normal with ReLU gain; layer-2: xavier_normal
    gain=1 (as in MLP.__init__); head layers: PyTorch default-style uniform.
    Weights are stored transposed to (in, out).  Returns (kernel_params,
    reference_params): kernel params pack logits_fc + value_fc into a single
    lane-padded head slab and cast matmul weights to bf16.
    """
    ks = jax.random.split(key, 8)

    def xavier_normal_t(k, fan_in, fan_out, gain):
        std = gain * jnp.sqrt(2.0 / (fan_in + fan_out))
        w = std * jax.random.normal(k, (fan_out, fan_in), dtype=jnp.float32)
        return w.T                                     # (in, out)

    def uniform_linear_t(kw, kb, fan_in, fan_out):
        bound = 1.0 / jnp.sqrt(fan_in)
        w = jax.random.uniform(kw, (fan_out, fan_in), jnp.float32, -bound, bound)
        b = jax.random.uniform(kb, (fan_out,), jnp.float32, -bound, bound)
        return w.T, b

    relu_gain = jnp.sqrt(2.0)
    w1 = xavier_normal_t(ks[0], obs_dim, hidden, relu_gain)
    b1 = jax.random.uniform(ks[1], (hidden,), jnp.float32,
                            -1.0 / jnp.sqrt(obs_dim), 1.0 / jnp.sqrt(obs_dim))
    w2 = xavier_normal_t(ks[2], hidden, hidden, 1.0)
    b2 = jax.random.uniform(ks[3], (hidden,), jnp.float32,
                            -1.0 / jnp.sqrt(hidden), 1.0 / jnp.sqrt(hidden))
    wl, bl = uniform_linear_t(ks[4], ks[5], hidden, num_outputs)
    wv, bv = uniform_linear_t(ks[6], ks[7], hidden, 1)
    temp = jnp.zeros((1, 1), jnp.float32)              # temp_mult initialized to 0.0

    # Fused, lane-padded head: [logits_fc | value_fc | zeros] -> width multiple of 128
    head_lanes = _round_up(num_outputs + 1, LANE)
    wh = jnp.zeros((hidden, head_lanes), jnp.float32)
    wh = wh.at[:, :num_outputs].set(wl)
    wh = wh.at[:, num_outputs:num_outputs + 1].set(wv)
    bh = jnp.zeros((1, head_lanes), jnp.float32)
    bh = bh.at[0, :num_outputs].set(bl)
    bh = bh.at[0, num_outputs].set(bv[0])

    kernel_params = dict(
        w1=w1.astype(jnp.bfloat16), b1=b1.reshape(1, hidden),
        w2=w2.astype(jnp.bfloat16), b2=b2.reshape(1, hidden),
        wh=wh.astype(jnp.bfloat16), bh=bh,
        temp=temp,
    )
    reference_params = dict(w1=w1, b1=b1, w2=w2, b2=b2,
                            wl=wl, bl=bl, wv=wv, bv=bv, temp=temp)
    return kernel_params, reference_params


def reference_forward(x, p):
    h1 = jnp.maximum(x @ p["w1"] + p["b1"], 0.0)
    feats = h1 @ p["w2"] + p["b2"]
    adv = feats @ p["wl"] + p["bl"]
    value = feats @ p["wv"] + p["bv"]
    logits = jnp.exp(p["temp"][0, 0]) * adv
    probs = jax.nn.softmax(logits, axis=-1)
    return probs, value


if __name__ == "__main__":
    key = jax.random.PRNGKey(0)
    k_x, k_p = jax.random.split(key)

    B, OBS_DIM, HIDDEN, NUM_OUTPUTS = 8, 16, 64, 8

    x = jax.random.normal(k_x, (B, OBS_DIM), dtype=jnp.float32)
    kernel_params, ref_params = init_params(k_p, OBS_DIM, HIDDEN, NUM_OUTPUTS)

    probs, value = mlp_policy_forward(x, kernel_params, NUM_OUTPUTS)
    probs = jax.block_until_ready(probs)
    value = jax.block_until_ready(value)

    assert probs.shape == (B, NUM_OUTPUTS)
    assert value.shape == (B, 1)
    # softmax rows must sum to 1 (approx reciprocal -> loose tolerance)
    assert jnp.allclose(jnp.sum(probs, axis=-1), 1.0, atol=5e-3)

    # compare against pure-JAX f32 reference (kernel matmuls are bf16)
    probs_ref, value_ref = reference_forward(x, ref_params)
    assert jnp.allclose(probs, probs_ref, atol=3e-2)
    assert jnp.allclose(value, value_ref, atol=3e-2)

    print("KERNEL_OK")
</pallas_src>

<mosaic_0001>
module attributes {stable_mosaic.version = 11 : i64} {
  func.func @mlp_policy_kernel(%arg0: i32, %arg1: memref<16x16xbf16, #tpu.memory_space<vmem>>, %arg2: memref<16x64xbf16, #tpu.memory_space<vmem>>, %arg3: memref<1x64xf32, #tpu.memory_space<vmem>>, %arg4: memref<64x64xbf16, #tpu.memory_space<vmem>>, %arg5: memref<1x64xf32, #tpu.memory_space<vmem>>, %arg6: memref<64x128xbf16, #tpu.memory_space<vmem>>, %arg7: memref<1x128xf32, #tpu.memory_space<vmem>>, %arg8: memref<1x1xf32, #tpu.memory_space<smem>>, %arg9: memref<16x128xf32, #tpu.memory_space<vmem>>) attributes {dimension_semantics = [#tpu.dimension_semantics<parallel>], iteration_bounds = array<i64: 1>, scalar_prefetch = 0 : i64, scratch_operands = 0 : i64, tpu.core_type = #tpu.core_type<tc>, window_params = [{transform_indices = @transform_0, window_bounds = array<i64: 16, 16>}, {pipeline_mode = #tpu.pipeline_mode<synchronous>, transform_indices = @transform_1, window_bounds = array<i64: 16, 64>}, {pipeline_mode = #tpu.pipeline_mode<synchronous>, transform_indices = @transform_2, window_bounds = array<i64: 1, 64>}, {pipeline_mode = #tpu.pipeline_mode<synchronous>, transform_indices = @transform_3, window_bounds = array<i64: 64, 64>}, {pipeline_mode = #tpu.pipeline_mode<synchronous>, transform_indices = @transform_4, window_bounds = array<i64: 1, 64>}, {pipeline_mode = #tpu.pipeline_mode<synchronous>, transform_indices = @transform_5, window_bounds = array<i64: 64, 128>}, {pipeline_mode = #tpu.pipeline_mode<synchronous>, transform_indices = @transform_6, window_bounds = array<i64: 1, 128>}, {transform_indices = @transform_7, window_bounds = array<i64: 1, 1>}, {transform_indices = @transform_8, window_bounds = array<i64: 16, 128>}]} {
    %c0 = arith.constant 0 : index
    %c0_0 = arith.constant 0 : index
    %0 = vector.load %arg1[%c0, %c0_0] : memref<16x16xbf16, #tpu.memory_space<vmem>>, vector<16x16xbf16>
    %c0_1 = arith.constant 0 : index
    %c0_2 = arith.constant 0 : index
    %1 = vector.load %arg2[%c0_1, %c0_2] : memref<16x64xbf16, #tpu.memory_space<vmem>>, vector<16x64xbf16>
    %cst = arith.constant dense<0.000000e+00> : vector<16x64xf32>
    %2 = tpu.matmul %0, %1, %cst {dimension_numbers = #tpu.dot_dimension_numbers<[1], [0], [0], [1], [0, 0, 1, 1], [], []>} : vector<16x16xbf16>, vector<16x64xbf16>, vector<16x64xf32> -> vector<16x64xf32>
    %c0_3 = arith.constant 0 : index
    %c0_4 = arith.constant 0 : index
    %3 = vector.load %arg3[%c0_3, %c0_4] : memref<1x64xf32, #tpu.memory_space<vmem>>, vector<1x64xf32>
    %4 = vector.broadcast %3 : vector<1x64xf32> to vector<16x64xf32>
    %5 = arith.addf %2, %4 : vector<16x64xf32>
    %cst_5 = arith.constant 0.000000e+00 : f32
    %6 = vector.broadcast %cst_5 : f32 to vector<16x64xf32>
    %7 = arith.maximumf %5, %6 : vector<16x64xf32>
    %8 = arith.truncf %7 : vector<16x64xf32> to vector<16x64xbf16>
    %c0_6 = arith.constant 0 : index
    %c0_7 = arith.constant 0 : index
    %9 = vector.load %arg4[%c0_6, %c0_7] : memref<64x64xbf16, #tpu.memory_space<vmem>>, vector<64x64xbf16>
    %cst_8 = arith.constant dense<0.000000e+00> : vector<16x64xf32>
    %10 = tpu.matmul %8, %9, %cst_8 {dimension_numbers = #tpu.dot_dimension_numbers<[1], [0], [0], [1], [0, 0, 1, 1], [], []>} : vector<16x64xbf16>, vector<64x64xbf16>, vector<16x64xf32> -> vector<16x64xf32>
    %c0_9 = arith.constant 0 : index
    %c0_10 = arith.constant 0 : index
    %11 = vector.load %arg5[%c0_9, %c0_10] : memref<1x64xf32, #tpu.memory_space<vmem>>, vector<1x64xf32>
    %12 = vector.broadcast %11 : vector<1x64xf32> to vector<16x64xf32>
    %13 = arith.addf %10, %12 : vector<16x64xf32>
    %14 = arith.truncf %13 : vector<16x64xf32> to vector<16x64xbf16>
    %c0_11 = arith.constant 0 : index
    %c0_12 = arith.constant 0 : index
    %15 = vector.load %arg6[%c0_11, %c0_12] : memref<64x128xbf16, #tpu.memory_space<vmem>>, vector<64x128xbf16>
    %cst_13 = arith.constant dense<0.000000e+00> : vector<16x128xf32>
    %16 = tpu.matmul %14, %15, %cst_13 {dimension_numbers = #tpu.dot_dimension_numbers<[1], [0], [0], [1], [0, 0, 1, 1], [], []>} : vector<16x64xbf16>, vector<64x128xbf16>, vector<16x128xf32> -> vector<16x128xf32>
    %c0_14 = arith.constant 0 : index
    %c0_15 = arith.constant 0 : index
    %17 = vector.load %arg7[%c0_14, %c0_15] : memref<1x128xf32, #tpu.memory_space<vmem>>, vector<1x128xf32>
    %18 = vector.broadcast %17 : vector<1x128xf32> to vector<16x128xf32>
    %19 = arith.addf %16, %18 : vector<16x128xf32>
    %c0_16 = arith.constant 0 : index
    %c0_17 = arith.constant 0 : index
    %20 = memref.load %arg8[%c0_16, %c0_17] : memref<1x1xf32, #tpu.memory_space<smem>>
    %21 = vector.broadcast %20 : f32 to vector<1x1xf32>
    %22 = math.exp %21 : vector<1x1xf32>
    %23 = tpu.iota {dimensions = array<i32: 1>} : vector<16x128xi32>
    %c8_i32 = arith.constant 8 : i32
    %24 = vector.broadcast %c8_i32 : i32 to vector<16x128xi32>
    %25 = arith.cmpi slt, %23, %24 : vector<16x128xi32>
    %26 = vector.broadcast %22 : vector<1x1xf32> to vector<16x128xf32>
    %27 = arith.mulf %19, %26 : vector<16x128xf32>
    %cst_18 = arith.constant -1.000000e+30 : f32
    %28 = vector.broadcast %cst_18 : f32 to vector<16x128xf32>
    %29 = arith.select %25, %27, %28 : vector<16x128xi1>, vector<16x128xf32>
    %cst_19 = arith.constant dense<0xFF800000> : vector<16xf32>
    %30 = vector.multi_reduction <maximumf>, %29, %cst_19 [1] : vector<16x128xf32> to vector<16xf32>
    %31 = vector.shape_cast %30 : vector<16xf32> to vector<16x1xf32>
    %32 = vector.broadcast %31 : vector<16x1xf32> to vector<16x128xf32>
    %33 = arith.subf %29, %32 : vector<16x128xf32>
    %34 = math.exp %33 : vector<16x128xf32>
    %cst_20 = arith.constant dense<0.000000e+00> : vector<16xf32>
    %35 = vector.multi_reduction <add>, %34, %cst_20 [1] : vector<16x128xf32> to vector<16xf32>
    %36 = vector.shape_cast %35 : vector<16xf32> to vector<16x1xf32>
    %37 = tpu.reciprocal %36 {approx = true} : vector<16x1xf32> -> vector<16x1xf32>
    %38 = vector.broadcast %37 : vector<16x1xf32> to vector<16x128xf32>
    %39 = arith.mulf %34, %38 : vector<16x128xf32>
    %c8_i32_21 = arith.constant 8 : i32
    %40 = vector.broadcast %c8_i32_21 : i32 to vector<16x128xi32>
    %41 = arith.cmpi eq, %23, %40 : vector<16x128xi32>
    %cst_22 = arith.constant 0.000000e+00 : f32
    %42 = vector.broadcast %cst_22 : f32 to vector<16x128xf32>
    %43 = arith.select %41, %19, %42 : vector<16x128xi1>, vector<16x128xf32>
    %44 = arith.addf %39, %43 : vector<16x128xf32>
    %c0_23 = arith.constant 0 : index
    %c0_24 = arith.constant 0 : index
    %45 = vector.load %arg9[%c0_23, %c0_24] : memref<16x128xf32, #tpu.memory_space<vmem>>, vector<16x128xf32>
    tpu.vector_store %arg9[%c0_23, %c0_24], %44 {strides = array<i32>} : memref<16x128xf32, #tpu.memory_space<vmem>>, vector<16x128xf32>,
    return
  }
  func.func @transform_0(%arg0: i32) -> (i32, i32) {
    %c0_i32 = arith.constant 0 : i32
    %c0_i32_0 = arith.constant 0 : i32
    return %arg0, %c0_i32 : i32, i32
  }
  func.func @transform_1(%arg0: i32) -> (i32, i32) {
    %c0_i32 = arith.constant 0 : i32
    %c0_i32_0 = arith.constant 0 : i32
    %c0_i32_1 = arith.constant 0 : i32
    return %c0_i32, %c0_i32_0 : i32, i32
  }
  func.func @transform_2(%arg0: i32) -> (i32, i32) {
    %c0_i32 = arith.constant 0 : i32
    %c0_i32_0 = arith.constant 0 : i32
    %c0_i32_1 = arith.constant 0 : i32
    return %c0_i32, %c0_i32_0 : i32, i32
  }
  func.func @transform_3(%arg0: i32) -> (i32, i32) {
    %c0_i32 = arith.constant 0 : i32
    %c0_i32_0 = arith.constant 0 : i32
    %c0_i32_1 = arith.constant 0 : i32
    return %c0_i32, %c0_i32_0 : i32, i32
  }
  func.func @transform_4(%arg0: i32) -> (i32, i32) {
    %c0_i32 = arith.constant 0 : i32
    %c0_i32_0 = arith.constant 0 : i32
    %c0_i32_1 = arith.constant 0 : i32
    return %c0_i32, %c0_i32_0 : i32, i32
  }
  func.func @transform_5(%arg0: i32) -> (i32, i32) {
    %c0_i32 = arith.constant 0 : i32
    %c0_i32_0 = arith.constant 0 : i32
    %c0_i32_1 = arith.constant 0 : i32
    return %c0_i32, %c0_i32_0 : i32, i32
  }
  func.func @transform_6(%arg0: i32) -> (i32, i32) {
    %c0_i32 = arith.constant 0 : i32
    %c0_i32_0 = arith.constant 0 : i32
    %c0_i32_1 = arith.constant 0 : i32
    return %c0_i32, %c0_i32_0 : i32, i32
  }
  func.func @transform_7(%arg0: i32) -> (i32, i32) {
    %c0_i32 = arith.constant 0 : i32
    %c0_i32_0 = arith.constant 0 : i32
    %c0_i32_1 = arith.constant 0 : i32
    return %c0_i32, %c0_i32_0 : i32, i32
  }
  func.func @transform_8(%arg0: i32) -> (i32, i32) {
    %c0_i32 = arith.constant 0 : i32
    %c0_i32_0 = arith.constant 0 : i32
    return %arg0, %c0_i32 : i32, i32
  }
}

</mosaic_0001>

<bundles_post_ra>
// kernel: tpu_custom_call.1
= control target key start
LH: loop header
LB: loop body
LE: loop exit
PB: predicated region body
PF: predicated region fallthrough
CT: control target
= control target key end

     0   :  { %14 = vsyncpa [#allocation4], 0  ;;  %s743_s0 = inlined_call_operand.hbm [shape: bf16[16,16], index: 0, kind: input, shape index: {}]   ;;  %s744_s1 = inlined_call_operand.hbm [shape: bf16[16,64], index: 1, kind: input, shape index: {}]   ;;  %s745_s2 = inlined_call_operand.vmem [shape: f32[1,64], index: 2, kind: input, shape index: {}]   ;;  %s746_s3 = inlined_call_operand.hbm [shape: bf16[64,64], index: 3, kind: input, shape index: {}]   ;;  %s747_s4 = inlined_call_operand.vmem [shape: f32[1,64], index: 4, kind: input, shape index: {}]   ;;  %s748_s5 = inlined_call_operand.hbm [shape: bf16[64,128], index: 5, kind: input, shape index: {}]   ;;  %s749_s6 = inlined_call_operand.vmem [shape: f32[1,128], index: 6, kind: input, shape index: {}]   ;;  %s750_s7 = inlined_call_operand.<no memory space> [shape: f32[1,1], index: 7, kind: input, shape index: {}]   ;;  %s751_s8 = inlined_call_operand.hbm [shape: f32[16,128], index: 8, kind: output, shape index: {}]  }
   0x1   :  { %15 = vsyncpa [#allocation7], 0 }
   0x2   :  { %16 = vsyncpa [#allocation10], 0 }
   0x3   :  { %17 = vsyncpa [#allocation5], 0  ;;  %s587_s27 = smov [#allocation6]   ;;  %s588_s29 = smov [#allocation3]  }
   0x4   :  { %s35_s28 = sshll.u32 %s587_s27, 4  ;;  %s23_s30 = sshll.u32 %s588_s29, 4  ;;  %s36_s28 = int_to_ptr.vmem [resolvable:$true] %s35_s28  ;;  %s643_s30 = int_to_ptr.vmem [resolvable:$true] %s23_s30 }
   0x5   :  { %s469_s11 = scalar_lea.hbm %s744_s1, 128 }
   0x6   :  { %p470_p0 = scmp.ne.s32.totalorder %s744_s1, %s469_s11  ;;  %p473_p1 = scmp.lt.u32.totalorder %s469_s11, %s744_s1 }
   0x8   :  { %p475_p2 = pnand %p473_p1, %p470_p0 }
   0xa   :  { %478 = shalt.err (!%p475_p2)
}
   0xb   :  { %s479_s16 = scalar_lea.vmem %s36_s28, 128  ;;  %p484_p4 = scmp.lt.s32.totalorder %s36_s28, %s36_s28 }
   0xc   :  { %p480_p3 = scmp.ne.s32.totalorder %s36_s28, %s479_s16  ;;  %p485_p5 = scmp.lt.s32.totalorder %s479_s16, %s479_s16 }
   0xe   :  { %p486_p6 = por %p485_p5, %p484_p4 }
  0x10   :  { %p487_p7 = pnand %p486_p6, %p480_p3 }
  0x12   :  { %490 = shalt.err (!%p487_p7)
}
  0x13   :  { %s589_s17 = smov 64   ;;  %s590_s18 = smov 4  }
  0x14   :  { %41 = dma.hbm_to_vmem [thread:$0]  %s744_s1, 128, %s36_s28, [#allocation7], %s589_s17, %s589_s17, %s590_s18  }
  0x15   :  { %s491_s23 = scalar_lea.hbm %s743_s0, 128 }
  0x16   :  { %p492_p8 = scmp.ne.s32.totalorder %s743_s0, %s491_s23  ;;  %p495_p9 = scmp.lt.u32.totalorder %s491_s23, %s743_s0 }
  0x18   :  { %p497_p10 = pnand %p495_p9, %p492_p8 }
  0x1a   :  { %500 = shalt.err (!%p497_p10)
}
  0x1b   :  { %s501_s29 = scalar_lea.vmem %s643_s30, 128  ;;  %p506_p12 = scmp.lt.s32.totalorder %s643_s30, %s643_s30 }
  0x1c   :  { %p502_p11 = scmp.ne.s32.totalorder %s643_s30, %s501_s29  ;;  %p507_p13 = scmp.lt.s32.totalorder %s501_s29, %s501_s29 }
  0x1e   :  { %p508_p0 = por %p507_p13, %p506_p12 }
  0x20   :  { %p509_p1 = pnand %p508_p0, %p502_p11 }
  0x22   :  { %512 = shalt.err (!%p509_p1)
}
  0x23   :  { %29 = dma.hbm_to_vmem [thread:$0]  %s743_s0, 128, %s643_s30, [#allocation4], %s589_s17, %s589_s17, %s590_s18  }
  0x24   :  { %s591_s9 = smov [#allocation8]   ;;  %s592_s11 = smov [#allocation9]  }
  0x25   :  { %s49_s10 = sshll.u32 %s591_s9, 4  ;;  %s63_s12 = sshll.u32 %s592_s11, 4  ;;  %s50_s10 = int_to_ptr.vmem [resolvable:$true] %s49_s10  ;;  %s680_s12 = int_to_ptr.vmem [resolvable:$true] %s63_s12 }
  0x26   :  { %s513_s15 = scalar_lea.hbm %s746_s3, 512 }
  0x27   :  { %p514_p2 = scmp.ne.s32.totalorder %s746_s3, %s513_s15  ;;  %p517_p3 = scmp.lt.u32.totalorder %s513_s15, %s746_s3 }
  0x29   :  { %p519_p4 = pnand %p517_p3, %p514_p2 }
  0x2b   :  { %522 = shalt.err (!%p519_p4)
}
  0x2c   :  { %s523_s0 = scalar_lea.vmem %s50_s10, 512  ;;  %p528_p6 = scmp.lt.s32.totalorder %s50_s10, %s50_s10 }
  0x2d   :  { %p524_p5 = scmp.ne.s32.totalorder %s50_s10, %s523_s0  ;;  %p529_p7 = scmp.lt.s32.totalorder %s523_s0, %s523_s0 }
  0x2f   :  { %p530_p8 = por %p529_p7, %p528_p6 }
  0x31   :  { %p531_p9 = pnand %p530_p8, %p524_p5 }
  0x33   :  { %534 = shalt.err (!%p531_p9)
}
  0x34   :  { %55 = dma.hbm_to_vmem [thread:$0]  %s746_s3, 512, %s50_s10, [#allocation7], %s589_s17, %s589_s17, %s590_s18  }
  0x35   :  { %s535_s25 = scalar_lea.hbm %s748_s5, 512 }
  0x36   :  { %p536_p10 = scmp.ne.s32.totalorder %s748_s5, %s535_s25  ;;  %p539_p11 = scmp.lt.u32.totalorder %s535_s25, %s748_s5 }
  0x38   :  { %p541_p12 = pnand %p539_p11, %p536_p10 }
  0x3a   :  { %544 = shalt.err (!%p541_p12)
}
  0x3b   :  { %s545_s28 = scalar_lea.vmem %s680_s12, 512  ;;  %p550_p0 = scmp.lt.s32.totalorder %s680_s12, %s680_s12 }
  0x3c   :  { %p546_p13 = scmp.ne.s32.totalorder %s680_s12, %s545_s28  ;;  %p551_p1 = scmp.lt.s32.totalorder %s545_s28, %s545_s28 }
  0x3e   :  { %p552_p2 = por %p551_p1, %p550_p0 }
  0x40   :  { %p553_p3 = pnand %p552_p2, %p546_p13 }
  0x42   :  { %556 = shalt.err (!%p553_p3)
}
  0x43   :  { %69 = dma.hbm_to_vmem [thread:$0]  %s748_s5, 512, %s680_s12, [#allocation10], %s589_s17, %s589_s17, %s590_s18  }
  0x44   :  { %579 = dma.done.wait [#allocation4], 128  }
  0x45   :  { %580 = vsyncadd [#allocation4], 4294967168 }
  0x46   :  { %581 = dma.done.wait [#allocation7], 640  }
  0x47   :  { %582 = vsyncadd [#allocation7], 4294966656 }
  0x48   :  { %583 = dma.done.wait [#allocation10], 512  }
  0x49   :  { %584 = vsyncadd [#allocation10], 4294966784  ;;  %v593_v0 = vmov 0.0   ;;  %vm594_vm0 = vmmov 0   ;;  %v449_v1 = vld [vmem:[#allocation6] sm:$0xff]   ;;  %v450_v2 = vld [vmem:[#allocation3] sm:$0xff]   ;;  %v326_v29 = vstv %s750_s7  ;;  %v329_v31 = vlaneseq }
  0x4a   :  { %408 = vmatprep.subr.bf16.mxu0 %v593_v0  ;;  %410 = vmatprep.mubr.msk.bf16.mxu0 %vm594_vm0, %v593_v0  ;;  %vm109_vm1 = vcmask 130048   ;;  %v451_v3 = vld [vmem:[#allocation8] sm:$0xff]   ;;  %v452_v4 = vld [vmem:[#allocation8 + $0x8] sm:$0xff]   ;;  %v453_v5 = vld [vmem:[#allocation8 + $0x10] sm:$0xff]   ;;  %vm196_vm2 = vcmask 523264  }
  0x4b   :  { %414 = vmatprep.subr.bf16.mxu1 %v593_v0  ;;  %422 = vmatprep.mubr.msk.bf16.mxu1 %vm594_vm0, %v593_v0  ;;  %v454_v6 = vld [vmem:[#allocation8 + $0x18] sm:$0xff]   ;;  %v455_v7 = vld [vmem:[#allocation9] sm:$0xff]   ;;  %v456_v8 = vld [vmem:[#allocation9 + $0x8] sm:$0xff]   ;;  %v327_v30 = vmul.f32 1.442695, %v326_v29  ;;  %v330_v32 = vand.u32 127, %v329_v31 }
  0x4c   :  { %409 = vmatpush3.bf16.msra.mxu0 %v449_v1  ;;  %415 = vmatpush3.bf16.msra.mxu1 %v451_v3  ;;  %v380_v9 = vld [vmem:[%s745_s2] ss:$0 sm:$0xff]  ;;  %v458_v20 = vld [vmem:[#allocation9 + $0x18] sm:$0xff]  }
  0x4d   :  { %426 = vmatprep.subr.bf16.mxu0 %v593_v0  ;;  %416 = vmatprep.subr.bf16.mxu1 %v593_v0  ;;  %v457_v19 = vld [vmem:[#allocation9 + $0x10] sm:$0xff]   ;;  %459 = vpow2.f32 %v327_v30  ;;  %vm354_vm3 = vcmp.eq.s32.totalorder %v330_v32, 8  ;;  %vm331_vm4 = vcmp.lt.s32.totalorder %v330_v32, 8 }
  0x4e   :  { %v384_v21 = vld [vmem:[%s747_s4] ss:$0 sm:$0xff]  ;;  %s595_s4 = smov [#allocation11]  }
  0x4f   :  { %411 = vmatmul.mubr.msk.bf16.vlgmr.msra.gmra.mrb[0].mxu0 %vm109_vm1, %v450_v2  ;;  %v390_v33 = vld [vmem:[%s749_s6] ss:$0 sm:$0xff]  ;;  %s366_s6 = sshll.u32 %s595_s4, 4  ;;  %s367_s6 = int_to_ptr.vmem [resolvable:$true] %s366_s6 }
  0x50   :  { %434 = vmatprep.mubr.msk.bf16.mxu0 %vm594_vm0, %v593_v0  ;;  %417 = vmatpush3.bf16.msra.mxu1 %v452_v4  ;;  %s557_s7 = scalar_lea.vmem %s367_s6, 256  ;;  %p562_p5 = scmp.lt.s32.totalorder %s367_s6, %s367_s6 }
  0x51   :  { %418 = vmatprep.subr.bf16.mxu1 %v593_v0  ;;  %427 = vmatpush3.bf16.msra.mxu0 %v455_v7  ;;  %p558_p4 = scmp.ne.s32.totalorder %s367_s6, %s557_s7  ;;  %p563_p6 = scmp.lt.s32.totalorder %s557_s7, %s557_s7 }
  0x52   :  { %428 = vmatprep.subr.bf16.mxu0 %v593_v0 }
  0x53   :  { %p564_p7 = por %p563_p6, %p562_p5 }
  0x54   :  { %419 = vmatpush3.bf16.msra.mxu1 %v453_v5 }
  0x55   :  { %420 = vmatprep.subr.bf16.mxu1 %v593_v0  ;;  %429 = vmatpush3.bf16.msra.mxu0 %v456_v8  ;;  %p565_p8 = pnand %p564_p7, %p558_p4 }
  0x56   :  { %430 = vmatprep.subr.bf16.mxu0 %v593_v0 }
  0x57   :  { %v460_v34 = vpop.eup %459 }
  0x58   :  { %421 = vmatpush3.bf16.msra.mxu1 %v454_v6 }
  0x59   :  { %431 = vmatpush3.bf16.msra.mxu0 %v457_v19 }
  0x5a   :  { %432 = vmatprep.subr.bf16.mxu0 %v593_v0 }
  0x5d   :  { %433 = vmatpush3.bf16.msra.mxu0 %v458_v20 }
 0x122   :  { %v147_v10 = vpop.f32.mrb[0].mxu0 }
 0x123   :  { %v148_v11 = vadd.f32 %v380_v9, %v147_v10  ;;  %v412_v12 = vpop.f32.mrb[1].mxu0 }
 0x124   :  { %v150_v13 = vpop.f32.mrb[2].mxu0 }
 0x125   :  { %v151_v14 = vadd.f32 %v380_v9, %v150_v13  ;;  %v413_v15 = vpop.f32.mrb[3].mxu0  ;;  %v154_v16 = vmax.f32 %v148_v11, 0.0 }
 0x127   :  { %v155_v17 = vmax.f32 %v151_v14, 0.0 }
 0x129   :  { %v156_v18 = vpack.c.bf16 %v155_v17, %v154_v16 }
 0x12b   :  { %423 = vmatmul.mubr.msk.bf16.vlgmr.msra.gmra.mrb[0].mxu1 %vm196_vm2, %v156_v18 }
 0x1fe   :  { %v234_v22 = vpop.f32.mrb[0].mxu1 }
 0x1ff   :  { %v424_v23 = vpop.f32.mrb[1].mxu1  ;;  %v235_v25 = vadd.f32 %v384_v21, %v234_v22 }
 0x200   :  { %v237_v24 = vpop.f32.mrb[2].mxu1 }
 0x201   :  { %v238_v26 = vadd.f32 %v384_v21, %v237_v24  ;;  %v425_v27 = vpop.f32.mrb[3].mxu1 }
 0x203   :  { %v241_v28 = vpack.c.bf16 %v238_v26, %v235_v25 }
 0x205   :  { %435 = vmatmul.mubr.msk.bf16.vlgmr.msra.gmra.mrb[4].mxu0 %vm196_vm2, %v241_v28 }
 0x2d8   :  { %v318_v35 = vpop.f32.mrb[4].mxu0 }
 0x2d9   :  { %v319_v36 = vadd.f32 %v390_v33, %v318_v35  ;;  %v436_v37 = vpop.f32.mrb[5].mxu0 }
 0x2da   :  { %v321_v38 = vpop.f32.mrb[6].mxu0 }
 0x2db   :  { %v355_v39 = vsel %vm354_vm3, %v319_v36, 0.0  ;;  %v322_v40 = vadd.f32 %v390_v33, %v321_v38  ;;  %v437_v41 = vpop.f32.mrb[7].mxu0  ;;  %v332_v42 = vmul.f32 %v460_v34, %v319_v36 }
 0x2dd   :  { %v356_v43 = vsel %vm354_vm3, %v322_v40, 0.0  ;;  %v334_v44 = vsel %vm331_vm4, %v332_v42, -1e+30  ;;  %v333_v45 = vmul.f32 %v460_v34, %v322_v40 }
 0x2de   :  { %336 = vmax.xlane.f32.xlu0 %v334_v44 }
 0x2df   :  { %v335_v46 = vsel %vm331_vm4, %v333_v45, -1e+30 }
 0x2e2   :  { %338 = vmax.xlane.f32.xlu0 %v335_v46 }
 0x36b   :  { %v337_v47 = vpop.xlane.xlu0 %336 }
 0x36c   :  { %v340_v48 = vsub.f32 %v334_v44, %v337_v47 }
 0x36e   :  { %v342_v49 = vmul.f32 1.442695, %v340_v48 }
 0x36f   :  { %v339_v50 = vpop.xlane.xlu0 %338 }
 0x370   :  { %461 = vpow2.f32 %v342_v49  ;;  %v341_v51 = vsub.f32 %v335_v46, %v339_v50 }
 0x372   :  { %v344_v52 = vmul.f32 1.442695, %v341_v51 }
 0x374   :  { %463 = vpow2.f32 %v344_v52 }
 0x37a   :  { %v462_v53 = vpop.eup %461 }
 0x37b   :  { %346 = vadd.xlane.f32.xlu1 %v462_v53 }
 0x37e   :  { %v464_v54 = vpop.eup %463 }
 0x37f   :  { %348 = vadd.xlane.f32.xlu1 %v464_v54 }
 0x408   :  { %v347_v55 = vpop.xlane.xlu1 %346 }
 0x409   :  { %465 = vrcp.f32 %v347_v55 }
 0x40c   :  { %v349_v56 = vpop.xlane.xlu1 %348 }
 0x40d   :  { %467 = vrcp.f32 %v349_v56 }
 0x413   :  { %v466_v57 = vpop.eup %465 }
 0x414   :  { %v352_v58 = vmul.f32 %v466_v57, %v462_v53 }
 0x416   :  { %v357_v59 = vadd.f32 %v355_v39, %v352_v58 }
 0x417   :  { %v468_v60 = vpop.eup %467 }
 0x418   :  { %v353_v61 = vmul.f32 %v468_v60, %v464_v54  ;;  %359 = vst [vmem:[#allocation11] sm:$0xff] %v357_v59 }
 0x41a   :  { %v358_v62 = vadd.f32 %v356_v43, %v353_v61 }
 0x41c   :  { %360 = vst [vmem:[#allocation11 + $0x8] sm:$0xff] %v358_v62 }
 0x41d   :  { %568 = shalt.err (!%p565_p8)
}
 0x41e   :  { %s569_s16 = scalar_lea.hbm %s751_s8, 256 }
 0x41f   :  { %p570_p9 = scmp.ne.s32.totalorder %s751_s8, %s569_s16  ;;  %p573_p10 = scmp.lt.u32.totalorder %s569_s16, %s751_s8 }
 0x421   :  { %p575_p11 = pnand %p573_p10, %p570_p9 }
 0x423   :  { %578 = shalt.err (!%p575_p11)
}
 0x424   :  { %s596_s30 = smov 128   ;;  %s597_s22 = smov 8  }
 0x425   :  { %372 = dma.vmem_to_hbm [thread:$0]  %s367_s6, 256, %s751_s8, [#allocation5], %s596_s30, %s596_s30, %s597_s22  }
 0x426   :  { %585 = dma.done.wait [#allocation5], 256  }
 0x427   :  { %586 = vsyncadd [#allocation5], 4294967040 }
 0x428   :  { %376 = vsyncpa [#allocation4], 1 }
 0x429   :  { %377 = vsyncpa [#allocation7], 1 }
 0x42a   :  { %378 = vsyncpa [#allocation10], 1 }
 0x42b   :  { %379 = vsyncpa [#allocation5], 1 }

</bundles_post_ra>
